<compile_context>
chip_gen: v6e
topology: v6e:2x2x1
jax: 0.10.0
libtpu: 0.0.40
codegen_flags: <defaults>
</compile_context>

<pallas_src>
import math
from functools import partial

import numpy as np
import jax
import jax.numpy as jnp
from jax.experimental import pallas as pl
from jax.experimental.pallas import tpu as pltpu

# ---- small synthetic config consistent with the module ----
MAX_LENGTH = 16   # max_seq_len
EMBED_DIM = 32    # embed_model_dim
BATCH = 2
SEQ = 8


# ---------------------------------------------------------------------------
# Pallas kernel
# ---------------------------------------------------------------------------

def _posemb_kernel(x_ref, pe_ref, o_ref, *, scale, sd):
    # x_ref : (B, S*D)        flattened activations (lane-dense, S*D % 128 == 0)
    # pe_ref: (1, max_len*D)  full positional table, row-major flattened
    # o_ref : (B, S*D)
    #
    # The first sd = S*D elements of the flattened pe are exactly pe[:S] flattened,
    # so a static lane slice selects the needed rows with no relayout.
    pe_row = pe_ref[:, :sd]                          # (1, S*D), static slice
    o_ref[...] = x_ref[...] * scale + pe_row         # pe broadcast over batch rows


def positional_embedding(x, pe):
    """x: (B, S, D) float32, pe: (max_len, D) float32 -> (B, S, D) float32."""
    B, S, D = x.shape
    max_len = pe.shape[0]
    sd = S * D

    # Free row-major reshapes: present lane-dense 2-D slabs to the kernel.
    x2 = x.reshape(B, sd)
    pe2 = pe.reshape(1, max_len * D)

    out2 = pl.pallas_call(
        partial(_posemb_kernel, scale=float(math.sqrt(D)), sd=sd),
        out_shape=jax.ShapeDtypeStruct((B, sd), x.dtype),
        in_specs=[
            pl.BlockSpec(memory_space=pltpu.MemorySpace.VMEM),
            pl.BlockSpec(memory_space=pltpu.MemorySpace.VMEM),
        ],
        out_specs=pl.BlockSpec(memory_space=pltpu.MemorySpace.VMEM),
    )(x2, pe2)

    return out2.reshape(B, S, D)


# ---------------------------------------------------------------------------
# Buffer construction (exact replica of PositionalEmbedding.__init__)
# ---------------------------------------------------------------------------

def make_pe(max_seq_len, d):
    # Replicates the module exactly, including the non-standard 2*(i+1)/d exponent
    # on the cosine term.
    pe = np.zeros((max_seq_len, d), dtype=np.float64)
    for pos in range(max_seq_len):
        for i in range(0, d, 2):
            pe[pos, i] = math.sin(pos / 10000 ** (2 * i / d))
            pe[pos, i + 1] = math.cos(pos / 10000 ** (2 * (i + 1) / d))
    return jnp.asarray(pe, dtype=jnp.float32)


if __name__ == "__main__":
    key = jax.random.PRNGKey(0)
    pe = make_pe(MAX_LENGTH, EMBED_DIM)
    x = jax.random.normal(key, (BATCH, SEQ, EMBED_DIM), jnp.float32)

    out = jax.block_until_ready(positional_embedding(x, pe))

    # reference check (same math, plain JAX)
    ref = x * math.sqrt(EMBED_DIM) + pe[None, :SEQ, :]
    assert out.shape == (BATCH, SEQ, EMBED_DIM)
    assert bool(jnp.all(jnp.isfinite(out)))
    np.testing.assert_allclose(np.asarray(out), np.asarray(ref), rtol=1e-6, atol=1e-6)
    print("KERNEL_OK")
</pallas_src>

<mosaic_0001>
module attributes {stable_mosaic.version = 11 : i64} {
  func.func @_posemb_kernel(%arg0: memref<2x256xf32, #tpu.memory_space<vmem>>, %arg1: memref<1x512xf32, #tpu.memory_space<vmem>>, %arg2: memref<2x256xf32, #tpu.memory_space<vmem>>) attributes {dimension_semantics = [], scalar_prefetch = 0 : i64, scratch_operands = 0 : i64, tpu.core_type = #tpu.core_type<tc>} {
    %c0 = arith.constant 0 : index
    %c0_0 = arith.constant 0 : index
    %0 = vector.load %arg1[%c0, %c0_0] : memref<1x512xf32, #tpu.memory_space<vmem>>, vector<1x256xf32>
    %c0_1 = arith.constant 0 : index
    %c0_2 = arith.constant 0 : index
    %1 = vector.load %arg0[%c0_1, %c0_2] : memref<2x256xf32, #tpu.memory_space<vmem>>, vector<2x256xf32>
    %cst = arith.constant 5.65685415 : f32
    %2 = vector.broadcast %cst : f32 to vector<2x256xf32>
    %3 = arith.mulf %1, %2 : vector<2x256xf32>
    %4 = vector.broadcast %0 : vector<1x256xf32> to vector<2x256xf32>
    %5 = arith.addf %3, %4 : vector<2x256xf32>
    %c0_3 = arith.constant 0 : index
    %c0_4 = arith.constant 0 : index
    %6 = vector.load %arg2[%c0_3, %c0_4] : memref<2x256xf32, #tpu.memory_space<vmem>>, vector<2x256xf32>
    tpu.vector_store %arg2[%c0_3, %c0_4], %5 {strides = array<i32>} : memref<2x256xf32, #tpu.memory_space<vmem>>, vector<2x256xf32>,
    return
  }
}

</mosaic_0001>

<bundles_post_ra>
// kernel: tpu_custom_call.1
= control target key start
LH: loop header
LB: loop body
LE: loop exit
PB: predicated region body
PF: predicated region fallthrough
CT: control target
= control target key end

     0   :  { %7 = vsyncpa [#allocation3], 0  ;;  %s173_s0 = inlined_call_operand.hbm [shape: f32[2,256], index: 0, kind: input, shape index: {}]   ;;  %s174_s1 = inlined_call_operand.hbm [shape: f32[1,512], index: 1, kind: input, shape index: {}]   ;;  %s175_s2 = inlined_call_operand.hbm [shape: f32[2,256], index: 2, kind: output, shape index: {}]  }
   0x1   :  { %8 = vsyncpa [#allocation6], 0 }
   0x2   :  { %9 = vsyncpa [#allocation4], 0  ;;  %s145_s9 = smov [#allocation2]   ;;  %s146_s11 = smov [#allocation5]  }
   0x3   :  { %s16_s10 = sshll.u32 %s145_s9, 4  ;;  %s26_s12 = sshll.u32 %s146_s11, 4  ;;  %s17_s10 = int_to_ptr.vmem [resolvable:$true] %s16_s10  ;;  %s27_s12 = int_to_ptr.vmem [resolvable:$true] %s26_s12 }
   0x4   :  { %s87_s13 = scalar_lea.vmem %s17_s10, 64  ;;  %p92_p1 = scmp.lt.s32.totalorder %s17_s10, %s17_s10 }
   0x5   :  { %p88_p0 = scmp.ne.s32.totalorder %s17_s10, %s87_s13  ;;  %p93_p2 = scmp.lt.s32.totalorder %s87_s13, %s87_s13 }
   0x7   :  { %p94_p3 = por %p93_p2, %p92_p1 }
   0x9   :  { %p95_p4 = pnand %p94_p3, %p88_p0 }
   0xb   :  { %98 = shalt.err (!%p95_p4)
}
   0xc   :  { %19 = dma.hbm_to_vmem [thread:$0]  %s173_s0, 64, %s17_s10, [#allocation3]  }
   0xd   :  { %s107_s16 = scalar_lea.vmem %s27_s12, 64  ;;  %p112_p6 = scmp.lt.s32.totalorder %s27_s12, %s27_s12 }
   0xe   :  { %p108_p5 = scmp.ne.s32.totalorder %s27_s12, %s107_s16  ;;  %p113_p7 = scmp.lt.s32.totalorder %s107_s16, %s107_s16 }
  0x10   :  { %p114_p8 = por %p113_p7, %p112_p6 }
  0x12   :  { %p115_p9 = pnand %p114_p8, %p108_p5 }
  0x14   :  { %118 = shalt.err (!%p115_p9)
}
  0x15   :  { %29 = dma.hbm_to_vmem [thread:$0]  %s174_s1, 64, %s27_s12, [#allocation6]  }
  0x16   :  { %139 = dma.done.wait [#allocation3], 64  }
  0x17   :  { %140 = vsyncadd [#allocation3], 4294967232 }
  0x18   :  { %141 = dma.done.wait [#allocation6], 64  }
  0x19   :  { %142 = vsyncadd [#allocation6], 4294967232  ;;  %v40_v0 = vlaneseq  ;;  %v147_v1 = vmov 1983009808   ;;  %v36_v7 = vld [vmem:[#allocation5] sm:$0x3] }
  0x1a   :  { %v50_v2 = vunpack.c.l.s4 %v147_v1  ;;  %v37_v8 = vld [vmem:[#allocation2] sm:$0xf]  ;;  %s148_s0 = smov [#allocation7]  }
  0x1b   :  { %v41_v3 = vshrl.u32 %v40_v0, 7  ;;  %v38_v12 = vmul.f32 5.656854, %v37_v8  ;;  %s65_s1 = sshll.u32 %s148_s0, 4  ;;  %s66_s1 = int_to_ptr.vmem [resolvable:$true] %s65_s1 }
  0x1c   :  { %v51_v6 = vunpack.c.0.s8 %v50_v2  ;;  %s119_s19 = scalar_lea.vmem %s66_s1, 64  ;;  %p124_p11 = scmp.lt.s32.totalorder %s66_s1, %s66_s1 }
  0x1d   :  { %v42_v4 = vsub.s32 0, %v41_v3  ;;  %v46_v5 = vsub.s32 1, %v41_v3  ;;  %p120_p10 = scmp.ne.s32.totalorder %s66_s1, %s119_s19  ;;  %p125_p12 = scmp.lt.s32.totalorder %s119_s19, %s119_s19 }
  0x1e   :  { %v54_v11 = vsub.s32 %v51_v6, %v41_v3 }
  0x1f   :  { %v43_v9 = vrot.slane %v36_v7, %v42_v4  ;;  %v47_v10 = vrot.slane %v36_v7, %v46_v5  ;;  %p126_p13 = por %p125_p12, %p124_p11 }
  0x21   :  { %v48_v13 = vcombine.low %v43_v9, %v47_v10  ;;  %p127_p0 = pnand %p126_p13, %p120_p10 }
  0x23   :  { %v55_v14 = vrot.slane %v48_v13, %v54_v11 }
  0x25   :  { %v57_v15 = vadd.f32 %v55_v14, %v38_v12 }
  0x27   :  { %58 = vst [vmem:[#allocation7] sm:$0xf] %v57_v15 }
  0x28   :  { %130 = shalt.err (!%p127_p0)
}
  0x29   :  { %68 = dma.vmem_to_hbm [thread:$0]  %s66_s1, 64, %s175_s2, [#allocation4]  }
  0x2a   :  { %143 = dma.done.wait [#allocation4], 64  }
  0x2b   :  { %144 = vsyncadd [#allocation4], 4294967232 }
  0x2c   :  { %72 = vsyncpa [#allocation3], 1 }
  0x2d   :  { %73 = vsyncpa [#allocation6], 1 }
  0x2e   :  { %74 = vsyncpa [#allocation4], 1 }

</bundles_post_ra>
